<compile_context>
chip_gen: v7x
topology: tpu7x:2x2x1
jax: 0.10.0
libtpu: 0.0.40
codegen_flags: <defaults>
</compile_context>

<pallas_src>
import jax
import jax.numpy as jnp
from jax import lax
from jax.experimental import pallas as pl
from jax.experimental.pallas import tpu as pltpu


def _round_up(x: int, m: int) -> int:
    return ((x + m - 1) // m) * m


def _lowrank_kernel(x_ref, v_ref, ut_ref, b_ref, o_ref):
    # x_ref : (TM, IN)      activation row tile (x.dtype)
    # v_ref : (RANK, IN)    V, already in x.dtype, grid-resident
    # ut_ref: (RANK, TN)    U^T (pre-transposed, padded), x.dtype, grid-resident
    # b_ref : (1, TN)       bias, x.dtype
    # o_ref : (TM, TN)      lane-dense output tile
    x = x_ref[...]

    # t = x @ V  (contract x feature axis with V's leading axis), f32 accumulate.
    t = lax.dot_general(
        x, v_ref[...],
        dimension_numbers=(((1,), (0,)), ((), ())),
        preferred_element_type=jnp.float32,
    )
    # Feed the second MXU pass in the activation dtype (bf16-native on v6e/v7x);
    # no-op when x is f32.
    t = t.astype(x.dtype)

    # y = t @ U^T (leading-axis contraction on the RHS — no in-kernel transpose).
    y = lax.dot_general(
        t, ut_ref[...],
        dimension_numbers=(((1,), (0,)), ((), ())),
        preferred_element_type=jnp.float32,
    )
    y = y + b_ref[...].astype(jnp.float32)   # f32 epilogue
    o_ref[...] = y.astype(o_ref.dtype)


def lowrank_linear(x, U, V, bias, *, tile_m=512, tile_n=1024):
    """y = x @ (U @ V.T).T + bias, computed as (x @ V) @ U^T in Pallas."""
    orig_shape = x.shape
    in_features = orig_shape[-1]
    out_features, rank = U.shape
    assert V.shape == (rank, in_features)

    x2d = x.reshape(-1, in_features)
    M = x2d.shape[0]
    x_item = jnp.dtype(x.dtype).itemsize

    # Sublane packing multiple for the activation dtype (f32=8, bf16=16, 8-bit=32).
    sub = {4: 8, 2: 16, 1: 32}.get(x_item, 8)

    # ---- output-feature tiling: lane-dense, multiples of 128 -----------------
    out_pad = _round_up(out_features, 128)
    if out_pad <= tile_n:
        tn = out_pad
    else:
        tn = _round_up(tile_n, 128)
        out_pad = _round_up(out_pad, tn)
    n_tiles = out_pad // tn

    # ---- row tiling -----------------------------------------------------------
    tm = min(tile_m, _round_up(max(M, 1), sub))
    if M > sub:
        # >=2 row tiles so both v7x TensorCores get work (harmless on 1-TC chips).
        tm = min(tm, _round_up(pl.cdiv(M, 2), sub))

    # ---- explicit VMEM budget -------------------------------------------------
    # Per-row bytes: double-buffered x and out tiles + f32 t / y temporaries.
    per_row = 2 * in_features * x_item + 2 * tn * x_item + 4 * rank + 4 * tn
    weight_bytes = (
        rank * in_features * x_item                               # V (single-buffered)
        + rank * tn * x_item * (1 if n_tiles == 1 else 2)          # U^T
        + 2 * tn * x_item                                          # bias
    )
    budget = 40 << 20  # leaves headroom under v7x's 64 MiB physical VMEM
    max_tm = max(sub, ((budget - weight_bytes) // per_row) // sub * sub)
    tm = max(sub, min(tm, max_tm))

    m_pad = _round_up(M, tm)
    if m_pad != M:                      # only copy x when the row count is ragged
        x2d = jnp.pad(x2d, ((0, m_pad - M), (0, 0)))
    m_tiles = m_pad // tm

    # ---- one-time weight preconditioning (cast + transpose + pad) -------------
    UT = U.T.astype(x.dtype)            # (rank, out_features)
    Vc = V.astype(x.dtype)
    b2d = bias.reshape(1, out_features).astype(x.dtype)
    if out_pad != out_features:
        UT = jnp.pad(UT, ((0, 0), (0, out_pad - out_features)))
        b2d = jnp.pad(b2d, ((0, 0), (0, out_pad - out_features)))

    resident = pl.Buffered(1)           # constant index_map -> one buffer suffices
    if n_tiles == 1:
        ut_spec = pl.BlockSpec((rank, tn), lambda i, j: (0, j), pipeline_mode=resident)
        b_spec = pl.BlockSpec((1, tn), lambda i, j: (0, j), pipeline_mode=resident)
    else:
        ut_spec = pl.BlockSpec((rank, tn), lambda i, j: (0, j))
        b_spec = pl.BlockSpec((1, tn), lambda i, j: (0, j))

    vmem_needed = weight_bytes + tm * per_row + (4 << 20)
    vmem_limit = int(min(max(vmem_needed, 16 << 20), 60 << 20))

    flops = 2 * m_pad * rank * (in_features + out_pad)
    bytes_accessed = (
        m_pad * in_features * x_item
        + m_pad * out_pad * x_item
        + UT.size * jnp.dtype(UT.dtype).itemsize
        + Vc.size * jnp.dtype(Vc.dtype).itemsize
        + b2d.size * jnp.dtype(b2d.dtype).itemsize
    )

    out = pl.pallas_call(
        _lowrank_kernel,
        out_shape=jax.ShapeDtypeStruct((m_pad, out_pad), x.dtype),
        grid=(m_tiles, n_tiles),
        in_specs=[
            pl.BlockSpec((tm, in_features), lambda i, j: (i, 0)),            # x rows
            pl.BlockSpec((rank, in_features), lambda i, j: (0, 0),
                         pipeline_mode=resident),                            # V
            ut_spec,                                                         # U^T
            b_spec,                                                          # bias
        ],
        out_specs=pl.BlockSpec((tm, tn), lambda i, j: (i, j)),
        compiler_params=pltpu.CompilerParams(
            dimension_semantics=("parallel", "parallel"),
            vmem_limit_bytes=vmem_limit,
        ),
        cost_estimate=pl.CostEstimate(
            flops=flops, transcendentals=0, bytes_accessed=bytes_accessed
        ),
    )(x2d, Vc, UT, b2d)

    if m_pad != M or out_pad != out_features:
        out = out[:M, :out_features]
    return out.reshape(*orig_shape[:-1], out_features)


if __name__ == "__main__":
    # Small shapes consistent with the module's forward:
    #   in_features = rank = 32 (required by the literal `U @ V.T`), out_features = 64
    batch, seq = 2, 8
    in_features = 32
    rank = 32
    out_features = 64

    key = jax.random.PRNGKey(0)
    kx, ku, kv, kb = jax.random.split(key, 4)

    x = jax.random.normal(kx, (batch, seq, in_features), dtype=jnp.float32)
    U = jax.random.normal(ku, (out_features, rank), dtype=jnp.float32) * 0.1
    V = jax.random.normal(kv, (rank, in_features), dtype=jnp.float32) * 0.1
    bias = jax.random.normal(kb, (out_features,), dtype=jnp.float32) * 0.1

    y = lowrank_linear(x, U, V, bias)
    y = jax.block_until_ready(y)

    # Pure-JAX reference (same math as the PyTorch forward).
    W = U @ V.T
    y_ref = x @ W.T + bias
    assert y.shape == (batch, seq, out_features)
    assert jnp.allclose(y, y_ref, atol=1e-4, rtol=1e-4), "mismatch vs reference"

    print("KERNEL_OK")
</pallas_src>

<mosaic_0001>
module attributes {stable_mosaic.version = 11 : i64} {
  func.func @_lowrank_kernel(%arg0: i32, %arg1: i32, %arg2: memref<8x32xf32, #tpu.memory_space<vmem>>, %arg3: memref<32x32xf32, #tpu.memory_space<vmem>>, %arg4: memref<32x128xf32, #tpu.memory_space<vmem>>, %arg5: memref<1x128xf32, #tpu.memory_space<vmem>>, %arg6: memref<8x128xf32, #tpu.memory_space<vmem>>) attributes {dimension_semantics = [#tpu.dimension_semantics<parallel>, #tpu.dimension_semantics<parallel>], iteration_bounds = array<i64: 2, 1>, scalar_prefetch = 0 : i64, scratch_operands = 0 : i64, tpu.core_type = #tpu.core_type<tc>, window_params = [{transform_indices = @transform_0, window_bounds = array<i64: 8, 32>}, {pipeline_mode = #tpu.pipeline_mode<synchronous>, transform_indices = @transform_1, window_bounds = array<i64: 32, 32>}, {pipeline_mode = #tpu.pipeline_mode<synchronous>, transform_indices = @transform_2, window_bounds = array<i64: 32, 128>}, {pipeline_mode = #tpu.pipeline_mode<synchronous>, transform_indices = @transform_3, window_bounds = array<i64: 1, 128>}, {transform_indices = @transform_4, window_bounds = array<i64: 8, 128>}]} {
    %c0 = arith.constant 0 : index
    %c0_0 = arith.constant 0 : index
    %0 = vector.load %arg2[%c0, %c0_0] : memref<8x32xf32, #tpu.memory_space<vmem>>, vector<8x32xf32>
    %c0_1 = arith.constant 0 : index
    %c0_2 = arith.constant 0 : index
    %1 = vector.load %arg3[%c0_1, %c0_2] : memref<32x32xf32, #tpu.memory_space<vmem>>, vector<32x32xf32>
    %cst = arith.constant dense<0.000000e+00> : vector<8x32xf32>
    %2 = tpu.matmul %0, %1, %cst {dimension_numbers = #tpu.dot_dimension_numbers<[1], [0], [0], [1], [0, 0, 1, 1], [], []>} : vector<8x32xf32>, vector<32x32xf32>, vector<8x32xf32> -> vector<8x32xf32>
    %c0_3 = arith.constant 0 : index
    %c0_4 = arith.constant 0 : index
    %3 = vector.load %arg4[%c0_3, %c0_4] : memref<32x128xf32, #tpu.memory_space<vmem>>, vector<32x128xf32>
    %cst_5 = arith.constant dense<0.000000e+00> : vector<8x128xf32>
    %4 = tpu.matmul %2, %3, %cst_5 {dimension_numbers = #tpu.dot_dimension_numbers<[1], [0], [0], [1], [0, 0, 1, 1], [], []>} : vector<8x32xf32>, vector<32x128xf32>, vector<8x128xf32> -> vector<8x128xf32>
    %c0_6 = arith.constant 0 : index
    %c0_7 = arith.constant 0 : index
    %5 = vector.load %arg5[%c0_6, %c0_7] : memref<1x128xf32, #tpu.memory_space<vmem>>, vector<1x128xf32>
    %6 = vector.broadcast %5 : vector<1x128xf32> to vector<8x128xf32>
    %7 = arith.addf %4, %6 : vector<8x128xf32>
    %c0_8 = arith.constant 0 : index
    %c0_9 = arith.constant 0 : index
    %8 = vector.load %arg6[%c0_8, %c0_9] : memref<8x128xf32, #tpu.memory_space<vmem>>, vector<8x128xf32>
    tpu.vector_store %arg6[%c0_8, %c0_9], %7 {strides = array<i32>} : memref<8x128xf32, #tpu.memory_space<vmem>>, vector<8x128xf32>,
    return
  }
  func.func @transform_0(%arg0: i32, %arg1: i32) -> (i32, i32) {
    %c0_i32 = arith.constant 0 : i32
    %c0_i32_0 = arith.constant 0 : i32
    return %arg0, %c0_i32 : i32, i32
  }
  func.func @transform_1(%arg0: i32, %arg1: i32) -> (i32, i32) {
    %c0_i32 = arith.constant 0 : i32
    %c0_i32_0 = arith.constant 0 : i32
    %c0_i32_1 = arith.constant 0 : i32
    return %c0_i32, %c0_i32_0 : i32, i32
  }
  func.func @transform_2(%arg0: i32, %arg1: i32) -> (i32, i32) {
    %c0_i32 = arith.constant 0 : i32
    %c0_i32_0 = arith.constant 0 : i32
    return %c0_i32, %arg1 : i32, i32
  }
  func.func @transform_3(%arg0: i32, %arg1: i32) -> (i32, i32) {
    %c0_i32 = arith.constant 0 : i32
    %c0_i32_0 = arith.constant 0 : i32
    return %c0_i32, %arg1 : i32, i32
  }
  func.func @transform_4(%arg0: i32, %arg1: i32) -> (i32, i32) {
    %c0_i32 = arith.constant 0 : i32
    return %arg0, %arg1 : i32, i32
  }
}

</mosaic_0001>

<bundles_post_ra>
// kernel: tpu_custom_call.1
= control target key start
LH: loop header
LB: loop body
LE: loop exit
PB: predicated region body
PF: predicated region fallthrough
CT: control target
= control target key end

     0   :  { %9 = vsyncpa [#allocation3], 0  ;;  %s1186_s0 = inlined_call_operand.hbm [shape: f32[16,32], index: 0, kind: input, shape index: {}]   ;;  %s1187_s1 = inlined_call_operand.hbm [shape: f32[32,32], index: 1, kind: input, shape index: {}]   ;;  %s1188_s2 = inlined_call_operand.hbm [shape: f32[32,128], index: 2, kind: input, shape index: {}]   ;;  %s1189_s3 = inlined_call_operand.vmem [shape: f32[1,128], index: 3, kind: input, shape index: {}]   ;;  %s1190_s4 = inlined_call_operand.hbm [shape: f32[16,128], index: 4, kind: output, shape index: {}]  }
   0x1   :  { %11 = vsyncpa [#allocation3 + $0x1], 0 }
   0x2   :  { %12 = vsyncpa [#allocation6], 0 }
   0x3   :  { %13 = vsyncpa [#allocation4], 0 }
   0x4   :  { %15 = vsyncpa [#allocation4 + $0x1], 0  ;;  %s929_s15 = smov 0   ;;  %s931_s16 = smov 0  }
   0x5   :  { %s933_s17 = smov 0   ;;  %s935_s18 = smov 0  }
   0x6   :  { %s937_s19 = smov 0   ;;  %s939_s20 = smov 0  }
   0x7 LB: > { %s568_s21 = sadd.s32 4294967295, %s893_s20   ;;  %s569_s22 = sadd.s32 4294967294, %s893_s20   ;;  %s893_s20 = sphi %s939_s20, %s21_s20   ;;  %s889_s19 = sphi %s937_s19, %s1212_s19   ;;  %s885_s18 = sphi %s935_s18, %s1211_s18   ;;  %s881_s17 = sphi %s933_s17, %s1210_s17   ;;  %s877_s16 = sphi %s931_s16, %s1209_s16   ;;  %s873_s15 = sphi %s929_s15, %s1208_s15  }
   0x8   : > { %p53_p0 = scmp.ne.s32.totalorder %s877_s16, %s873_s15  ;;  %p963_p1 = scmp.eq.s32.totalorder %s568_s21, 0 }
   0x9   : > { %p967_p2 = scmp.eq.s32.totalorder %s568_s21, 1  ;;  %p158_p3 = scmp.eq.s32.totalorder %s569_s22, 1 }
   0xa   : > { %s1195_s23 = scalar_select %p963_p1, 1, 0 }
   0xb   : > { %p973_p4 = por %p963_p1, %p53_p0  ;;  %p570_p5 = scmp.ge.s32.totalorder %s893_s20, 1 }
   0xc   : > { %p978_p6 = por %p158_p3, %p53_p0  ;;  %p165_p7 = scmp.lt.s32.totalorder %s893_s20, 3 }
   0xd   : > { %s1197_s25 = scalar_select %p973_p4, 1, 0 }
   0xe   : > { %s1198_s26 = scalar_select %p978_p6, 1, 0 }
   0xf   : > { %p983_p8 = pnand %p570_p5, %p165_p7  ;;  %s895_s28 = smov [#allocation5]  }
  0x10   : > { %s177_s29 = sshll.u32 %s895_s28, 4  ;;  %s896_s5 = smov [#allocation7]   ;;  %s987_s29 = int_to_ptr.vmem [resolvable:$true] %s177_s29 }
  0x11   : > { %p645_p9 = pneg %p983_p8  ;;  %s192_s6 = sshll.u32 %s896_s5, 4  ;;  %s998_s6 = int_to_ptr.vmem [resolvable:$true] %s192_s6 }
  0x12   : > { %s721_s9 = scalar_lea.hbm %s1187_s1, 512 }
  0x13   : > { %p994_p11 = pnand %p645_p9, %p963_p1  ;;  %p722_p12 = scmp.ne.s32.totalorder %s1187_s1, %s721_s9 }
  0x14   : > { %p728_p5 = scmp.lt.u32.totalorder %s721_s9, %s1187_s1 }
  0x15   : > { %p723_p13 = pneg %p994_p11 }
  0x17   : > { %p724_p0 = pnand %p723_p13, %p722_p12 }
  0x19   : > { %p725_p3 = pneg %p724_p0 }
  0x1b   : > { %p730_p7 = pnand %p728_p5, %p725_p3 }
  0x1d   : > { %733 = shalt.err (!%p730_p7)
}
  0x1e   : > { %s734_s14 = scalar_lea.vmem %s987_s29, 512  ;;  %p742_p1 = scmp.lt.s32.totalorder %s987_s29, %s987_s29 }
  0x1f   : > { %p735_p9 = scmp.ne.s32.totalorder %s987_s29, %s734_s14  ;;  %p743_p12 = scmp.lt.s32.totalorder %s734_s14, %s734_s14 }
  0x21   : > { %p737_p10 = pnand %p735_p9, %p723_p13  ;;  %p744_p0 = por %p743_p12, %p742_p1 }
  0x23   : > { %p738_p6 = pneg %p737_p10 }
  0x25   : > { %p745_p4 = pnand %p744_p0, %p738_p6 }
  0x27   : > { %748 = shalt.err (!%p745_p4)
}
  0x28   : > { %s897_s21 = smov 128   ;;  %s898_s22 = smov 8  }
  0x29   : > { %648 = dma.hbm_to_vmem [thread:$0]  (!%p994_p11), %s1187_s1, 512, %s987_s29, [#allocation6], %s897_s21, %s897_s21, %s898_s22  }
  0x2a   : > { %s749_s9 = scalar_lea.hbm %s1188_s2, 512 }
  0x2b   : > { %p750_p1 = scmp.ne.s32.totalorder %s1188_s2, %s749_s9  ;;  %p756_p10 = scmp.lt.u32.totalorder %s749_s9, %s1188_s2 }
  0x2d   : > { %p752_p4 = pnand %p750_p1, %p723_p13 }
  0x2f   : > { %p753_p6 = pneg %p752_p4 }
  0x31   : > { %p758_p3 = pnand %p756_p10, %p753_p6 }
  0x33   : > { %761 = shalt.err (!%p758_p3)
}
  0x34   : > { %s762_s29 = scalar_lea.vmem %s998_s6, 512  ;;  %p770_p12 = scmp.lt.s32.totalorder %s998_s6, %s998_s6 }
  0x35   : > { %p763_p5 = scmp.ne.s32.totalorder %s998_s6, %s762_s29  ;;  %p771_p0 = scmp.lt.s32.totalorder %s762_s29, %s762_s29 }
  0x37   : > { %p765_p7 = pnand %p763_p5, %p723_p13  ;;  %p772_p1 = por %p771_p0, %p770_p12 }
  0x39   : > { %p766_p9 = pneg %p765_p7 }
  0x3b   : > { %p773_p4 = pnand %p772_p1, %p766_p9 }
  0x3d   : > { %776 = shalt.err (!%p773_p4)
}
  0x3e   : > { %651 = dma.hbm_to_vmem [thread:$0]  (!%p994_p11), %s1188_s2, 512, %s998_s6, [#allocation6], %s897_s21, %s897_s21, %s898_s22  }
  0x3f   : > { %s33_s5 = sadd.s32 1, %s889_s19  ;;  %s40_s7 = sadd.s32 1, %s881_s17 }
  0x40   : > { %p35_p13 = scmp.ge.s32.totalorder %s33_s5, 2  ;;  %p47_p6 = scmp.ne.s32.totalorder %s881_s17, %s877_s16 }
  0x41   : > { %p48_p10 = scmp.eq.s32.totalorder %s893_s20, 0  ;;  %p662_p3 = scmp.lt.s32.totalorder %s893_s20, 2 }
  0x42   : > { %s1214_s5 = smov (%p35_p13, %s33_s5), 0  ;;  %p1062_p7 = por %p967_p2, %p47_p6 }
  0x43   : > { %p49_p5 = por %p48_p10, %p47_p6  ;;  %s37_s8 = ssub.s32 %s889_s19, %s1214_s5 }
  0x44   : > { %s1201_s30 = scalar_select %p1062_p7, 1, 0 }
  0x45   : > { %s212_s9 = sand.u32 1, %s881_s17   ;;  %p38_p9 = scmp.eq.s32.totalorder %s37_s8, 0 }
  0x46   : > { %s575_s6 = sshll.u32 %s212_s9, 3  ;;  %s576_s21 = sshll.u32 %s889_s19, 7 }
  0x47   : > { %s1071_s22 = scalar_select %p38_p9, %s881_s17, %s40_s7  }
  0x48   : > { %s1076_s12 = scalar_lea.hbm %s1186_s0, %s576_s21  ;;  %s216_s24 = scalar_lea.vmem [#allocation2], %s575_s6 }
  0x49   : > { %s223_s13 = sshll.u32 %s216_s24, 4  ;;  %p1080_p2 = pnand %p662_p3, %p49_p5  ;;  %s1084_s13 = int_to_ptr.vmem [resolvable:$true] %s223_s13 }
  0x4a   : > { %s213_s14 = scalar_lea.sflag [#allocation3], %s212_s9  ;;  %s777_s28 = scalar_lea.hbm %s1076_s12, 128 }
  0x4b   : > { %p778_p11 = scmp.ne.s32.totalorder %s1076_s12, %s777_s28  ;;  %p779_p12 = pneg %p1080_p2 }
  0x4c   : > { %s782_s6 = scalar_lea.hbm %s1186_s0, 256  ;;  %p783_p4 = scmp.lt.u32.totalorder %s1076_s12, %s1186_s0 }
  0x4d   : > { %p780_p0 = pnand %p779_p12, %p778_p11  ;;  %p784_p13 = scmp.lt.u32.totalorder %s782_s6, %s777_s28 }
  0x4e   : > { %p786_p10 = scmp.lt.u32.totalorder %s777_s28, %s1076_s12 }
  0x4f   : > { %p781_p1 = pneg %p780_p0  ;;  %p785_p6 = por %p784_p13, %p783_p4 }
  0x51   : > { %p787_p3 = por %p786_p10, %p785_p6 }
  0x53   : > { %p788_p5 = pnand %p787_p3, %p781_p1 }
  0x55   : > { %791 = shalt.err (!%p788_p5)
}
  0x56   : > { %s792_s9 = scalar_lea.vmem %s1084_s13, 128  ;;  %s899_s11 = smov [#allocation2]  }
  0x57   : > { %p793_p9 = scmp.ne.s32.totalorder %s1084_s13, %s792_s9  ;;  %s797_s24 = sshll.u32 %s899_s11, 4  ;;  %s798_s24 = int_to_ptr.vmem [resolvable:$false] %s797_s24 }
  0x58   : > { %s799_s7 = scalar_lea.vmem %s798_s24, 256  ;;  %p800_p7 = scmp.lt.s32.totalorder %s1084_s13, %s798_s24 }
  0x59   : > { %p795_p11 = pnand %p793_p9, %p779_p12  ;;  %p801_p4 = scmp.lt.s32.totalorder %s799_s7, %s792_s9 }
  0x5b   : > { %p796_p0 = pneg %p795_p11  ;;  %p802_p13 = por %p801_p4, %p800_p7 }
  0x5d   : > { %p803_p6 = pnand %p802_p13, %p796_p0 }
  0x5f   : > { %806 = shalt.err (!%p803_p6)
}
  0x60   : > { %655 = dma.hbm_to_vmem [thread:$0]  (!%p1080_p2), %s1076_s12, 128, %s1084_s13, %s213_s14  }
  0x61   : > { %232 = sbr.rel (%p983_p8) target bundleno = 559 (0x22f), region = 36  ;;  %s1114_s28 = sand.u32 (!%p983_p8), 1, %s877_s16  }
  0x62   : > { %s578_s8 = sshll.u32 (!%p983_p8), %s1114_s28, 3  ;;  %s235_s6 = scalar_lea.sflag (!%p983_p8), [#allocation3], %s1114_s28 }
  0x63   : > { %s238_s21 = scalar_lea.vmem (!%p983_p8), [#allocation2], %s578_s8  ;;  %p1203_p7 = scmp.ne.s32.totalorder (!%p983_p8), %s1197_s25, 0 }
  0x68   : > { %860 = dma.done.wait (%p1203_p7), %s235_s6, 128  }
  0x69   : > { %862 = vsyncadd (%p1203_p7), %s235_s6, 4294967168  ;;  %p1204_p2 = scmp.ne.s32.totalorder %s1195_s23, 0 }
  0x6b   : > { %864 = dma.done.wait (%p1204_p2), [#allocation6], 1024  }
  0x6c   : > { %866 = vsyncadd (%p1204_p2), [#allocation6], 4294966272  ;;  %v900_v0 = vmov 0.0|0.0   ;;  %vm901_vm0 = vmmov 0   ;;  %v902_v1 = vmov 0.0   ;;  %v278_v2 = vld [vmem:[#allocation5] sm:$0xff] }
  0x6d   : > { %621 = vmatprep.subr.bf16.mxu0 %v900_v0  ;;  %607 = vmatprep.mubr.msk.f32.mxu0 %vm901_vm0, %v902_v1  ;;  %v279_v3 = vld [vmem:[#allocation5 + $0x8] sm:$0xff]  ;;  %v280_v4 = vld [vmem:[#allocation5 + $0x10] sm:$0xff]  ;;  %v281_v6 = vld [vmem:[#allocation5 + $0x18] sm:$0xff]  ;;  %vm282_vm1 = vcmask 261120   ;;  %s586_s27 = sshll.u32 %s885_s18, 7  ;;  %s273_s12 = scalar_lea.vmem [#allocation8], %s578_s8 }
  0x6e   : > { %627 = vmatprep.subr.bf16.mxu1 %v900_v0  ;;  %618 = vmatprep.mubr.msk.f32.mxu1 %vm901_vm0, %v902_v1  ;;  %v622_v5 = vpack.c.bf16 %v279_v3, %v278_v2  ;;  %v356_v7 = vld [vmem:[#allocation7] sm:$0xff]  ;;  %v357_v8 = vld [vmem:[#allocation7 + $0x8] sm:$0xff]  ;;  %v358_v9 = vld [vmem:[#allocation7 + $0x10] sm:$0xff]  ;;  %v625_v11 = vpack.c.bf16 %v281_v6, %v280_v4  ;;  %s456_s13 = sshll.u32 %s273_s12, 4  ;;  %s1137_s10 = scalar_lea.hbm %s1190_s4, %s586_s27  ;;  %s1139_s13 = int_to_ptr.vmem [resolvable:$true] %s456_s13 }
  0x6f   : > { %v359_v10 = vld [vmem:[#allocation7 + $0x18] sm:$0xff]  ;;  %v628_v12 = vpack.c.bf16 %v357_v8, %v356_v7  ;;  %v583_v17 = vld [vmem:[%s1189_s3] ss:$0 sm:$0xff]  ;;  %s442_s9 = scalar_lea.sflag [#allocation4], %s1114_s28  ;;  %s807_s11 = scalar_lea.vmem %s1139_s13, 128 }
  0x70   : > { %623 = vmatpush3.bf16.msra.mxu0 %v622_v5  ;;  %v631_v13 = vpack.c.bf16 %v359_v10, %v358_v9  ;;  %v277_v14 = vld [vmem:[%s238_s21] sm:$0xff]  ;;  %p808_p8 = scmp.ne.s32.totalorder %s1139_s13, %s807_s11  ;;  %p1205_p12 = scmp.ne.s32.totalorder %s1201_s30, 0 }
  0x71   : > { %624 = vmatprep.subr.bf16.mxu0 %v900_v0  ;;  %629 = vmatpush3.bf16.msra.mxu1 %v628_v12  ;;  %s903_s18 = smov [#allocation8]  }
  0x72   : > { %630 = vmatprep.subr.bf16.mxu1 %v900_v0  ;;  %p809_p1 = pnand %p808_p8, %p1205_p12  ;;  %s811_s24 = sshll.u32 %s903_s18, 4  ;;  %s812_s24 = int_to_ptr.vmem [resolvable:$false] %s811_s24 }
  0x73   : > { %s813_s7 = scalar_lea.vmem %s812_s24, 256  ;;  %p814_p3 = scmp.lt.s32.totalorder %s1139_s13, %s812_s24 }
  0x74   : > { %626 = vmatpush3.bf16.msra.mxu0 %v625_v11  ;;  %p810_p10 = pneg %p809_p1  ;;  %p815_p5 = scmp.lt.s32.totalorder %s813_s7, %s807_s11 }
  0x75   : > { %632 = vmatpush3.bf16.msra.mxu1 %v631_v13 }
  0x76   : > { %p816_p9 = por %p815_p5, %p814_p3 }
  0x77   : > { %608 = vmatmul.mubr.msk.f32.vlgmr.msra.gmra.mrb[0].mxu0 %vm282_vm1, %v277_v14 }
  0x78   : > { %p817_p11 = pnand %p816_p9, %p810_p10 }
 0x14a   : > { %v352_v15 = vpop.f32.mrb[0].mxu0 }
 0x14b   : > { %v609_v16 = vpop.f32.mrb[1].mxu0  ;;  %619 = vmatmul.mubr.msk.f32.vlgmr.msra.gmra.mrb[0].mxu1 %vm282_vm1, %v352_v15 }
 0x21e   : > { %v436_v18 = vpop.f32.mrb[0].mxu1 }
 0x21f   : > { %v437_v19 = vadd.f32 %v583_v17, %v436_v18  ;;  %v620_v20 = vpop.f32.mrb[1].mxu1 }
 0x221   : > { %440 = vst [vmem:[%s273_s12] sm:$0xff] %v437_v19 }
 0x222   : > { %820 = shalt.err (!%p817_p11)
}
 0x223   : > { %s821_s28 = scalar_lea.hbm %s1137_s10, 128  ;;  %s825_s21 = scalar_lea.hbm %s1190_s4, 256 }
 0x224   : > { %p822_p0 = scmp.ne.s32.totalorder %s1137_s10, %s821_s28  ;;  %p826_p6 = scmp.lt.u32.totalorder %s1137_s10, %s1190_s4 }
 0x225   : > { %p827_p7 = scmp.lt.u32.totalorder %s825_s21, %s821_s28  ;;  %p829_p8 = scmp.lt.u32.totalorder %s821_s28, %s1137_s10 }
 0x226   : > { %p823_p4 = pnand %p822_p0, %p1205_p12 }
 0x227   : > { %p828_p2 = por %p827_p7, %p826_p6 }
 0x228   : > { %p824_p13 = pneg %p823_p4 }
 0x229   : > { %p830_p1 = por %p829_p8, %p828_p2 }
 0x22b   : > { %p831_p10 = pnand %p830_p1, %p824_p13 }
 0x22d   : > { %834 = shalt.err (!%p831_p10)
}
 0x22e   : > { %643 = dma.vmem_to_hbm [thread:$0]  (%p1205_p12), %s1139_s13, 128, %s1137_s10, %s442_s9  }
 0x22f PF: > { %s468_s27 = sand.u32 1, %s873_s15   ;;  %p1206_p3 = scmp.ne.s32.totalorder %s1198_s26, 0 }
 0x230   : > { %p1207_p5 = scmp.ge.s32.totalorder %s893_s20, 2  ;;  %s469_s12 = scalar_lea.sflag [#allocation4], %s468_s27 }
 0x232   : > { %p657_p9 = pnand %p1207_p5, %p1206_p3 }
 0x234   : > { %868 = dma.done.wait (!%p657_p9), %s469_s12, 128  }
 0x235   : > { %870 = vsyncadd (!%p657_p9), %s469_s12, 4294967168  ;;  %s21_s20 = sadd.s32 1, %s893_s20   ;;  %s1208_s15 = smov %s877_s16 }
 0x236   : > { %p18_p11 = scmp.ge.s32.totalorder %s21_s20, 4   ;;  %s1209_s16 = smov %s881_s17 }
 0x237   : > { %s1210_s17 = smov %s1071_s22  ;;  %s1211_s18 = smov %s889_s19 }
 0x238   : > { %s1212_s19 = smov %s1214_s5  ;;  %20 = sbr.rel (!%p18_p11) target bundleno = 7 (0x7), region = 93 }
 0x23f   :  { %474 = vsyncpa [#allocation3], 1 }
 0x240   :  { %476 = vsyncpa [#allocation3 + $0x1], 1 }
 0x241   :  { %477 = vsyncpa [#allocation6], 1 }
 0x242   :  { %478 = vsyncpa [#allocation4], 1 }
 0x243   :  { %480 = vsyncpa [#allocation4 + $0x1], 1 }

</bundles_post_ra>
